<compile_context>
chip_gen: v5e
topology: v5e:2x2
jax: 0.10.0
libtpu: 0.0.40
codegen_flags: <defaults>
</compile_context>

<pallas_src>
import math

import jax
import jax.numpy as jnp
from jax.experimental import pallas as pl
from jax.experimental.pallas import tpu as pltpu


def _round_up(x: int, m: int) -> int:
    return (x + m - 1) // m * m


def _mimo_linear_kernel(x_ref, w_ref, b_ref, o_ref):
    # x_ref: (tm, K) bf16   w_ref: (K, tn) bf16   b_ref: (1, tn) f32   o_ref: (tm, tn)
    acc = jnp.dot(x_ref[...], w_ref[...], preferred_element_type=jnp.float32)
    o_ref[...] = (acc + b_ref[...]).astype(o_ref.dtype)


def mimo_forward(x, w_t, b, num_layer, size_out, *, compute_dtype=jnp.bfloat16):
    """MIMO forward: (x @ w_t + b).reshape(-1, num_layer, size_out).

    x   : (B, size_in)
    w_t : (size_in, size_out * num_layer)   pre-transposed nn.Linear weight
    b   : (size_out * num_layer,)
    """
    B, K = x.shape
    N = w_t.shape[1]
    assert N == num_layer * size_out
    out_dtype = x.dtype

    # --- lane-dense / tile-aligned padding -------------------------------
    N_pad = _round_up(N, 128)
    # Largest 128-multiple tile that divides N_pad (caps VMEM per tile).
    tn = 512 if N_pad % 512 == 0 else (256 if N_pad % 256 == 0 else 128)
    # Batch tile: sublane-aligned (multiple of 8), capped at 128.
    tm = min(128, _round_up(B, 8))
    B_pad = _round_up(B, tm)

    x_p = x if B_pad == B else jnp.pad(x, ((0, B_pad - B), (0, 0)))
    if N_pad == N:
        w_p, b_p = w_t, b
    else:
        w_p = jnp.pad(w_t, ((0, 0), (0, N_pad - N)))
        b_p = jnp.pad(b, (0, N_pad - N))

    # bf16 inputs for the MXU; accumulation and bias add stay f32.
    x_p = x_p.astype(compute_dtype)
    w_p = w_p.astype(compute_dtype)
    b2 = b_p.reshape(1, N_pad).astype(jnp.float32)

    grid = (B_pad // tm, N_pad // tn)

    out = pl.pallas_call(
        _mimo_linear_kernel,
        out_shape=jax.ShapeDtypeStruct((B_pad, N_pad), out_dtype),
        grid_spec=pl.GridSpec(
            grid=grid,
            in_specs=[
                pl.BlockSpec((tm, K), lambda i, j: (i, 0)),   # x tile: batch axis only
                pl.BlockSpec((K, tn), lambda i, j: (0, j)),   # weight tile: N axis only
                pl.BlockSpec((1, tn), lambda i, j: (0, j)),   # bias tile: N axis only
            ],
            out_specs=pl.BlockSpec((tm, tn), lambda i, j: (i, j)),
        ),
        compiler_params=pltpu.CompilerParams(
            dimension_semantics=("parallel", "parallel"),  # megacore on v7x
            vmem_limit_bytes=32 * 1024 * 1024,             # fits v5e/v6e/v7x with headroom
        ),
    )(x_p, w_p, b2)

    # Strip padding, then x.view(-1, num_layer, size_out).
    return out[:B, :N].reshape(-1, num_layer, size_out)


def _check_case(key, batch, size_in, size_out, num_layer):
    N = size_out * num_layer
    kx, kw, kb = jax.random.split(key, 3)
    bound = 1.0 / math.sqrt(size_in)
    # PyTorch stores Linear weight as (out_features, in_features); transpose once.
    w = jax.random.uniform(kw, (N, size_in), jnp.float32, minval=-bound, maxval=bound)
    b = jax.random.uniform(kb, (N,), jnp.float32, minval=-bound, maxval=bound)
    x = jax.random.normal(kx, (batch, size_in), jnp.float32)
    w_t = jnp.transpose(w)

    out = jax.block_until_ready(mimo_forward(x, w_t, b, num_layer, size_out))
    assert out.shape == (batch, num_layer, size_out), out.shape

    # Reference with the same bf16 input rounding (f32 accumulation).
    xb = x.astype(jnp.bfloat16).astype(jnp.float32)
    wb = w_t.astype(jnp.bfloat16).astype(jnp.float32)
    ref = (xb @ wb + b).reshape(-1, num_layer, size_out)
    err = float(jnp.max(jnp.abs(out - ref)))
    assert jnp.allclose(out, ref, atol=2e-3, rtol=2e-3), err


if __name__ == "__main__":
    key = jax.random.PRNGKey(0)
    k1, k2 = jax.random.split(key)

    # Small shapes consistent with the module's forward.
    _check_case(k1, batch=8, size_in=32, size_out=16, num_layer=3)

    # Multi-tile case (exercises batch + N padding and the 2-D grid).
    _check_case(k2, batch=200, size_in=96, size_out=80, num_layer=3)

    print("KERNEL_OK")
</pallas_src>

<mosaic_0001>
module attributes {stable_mosaic.version = 11 : i64} {
  func.func @_mimo_linear_kernel(%arg0: i32, %arg1: i32, %arg2: memref<8x32xbf16, #tpu.memory_space<vmem>>, %arg3: memref<32x128xbf16, #tpu.memory_space<vmem>>, %arg4: memref<1x128xf32, #tpu.memory_space<vmem>>, %arg5: memref<8x128xf32, #tpu.memory_space<vmem>>) attributes {dimension_semantics = [#tpu.dimension_semantics<parallel>, #tpu.dimension_semantics<parallel>], iteration_bounds = array<i64: 1, 1>, scalar_prefetch = 0 : i64, scratch_operands = 0 : i64, tpu.core_type = #tpu.core_type<tc>, window_params = [{transform_indices = @transform_0, window_bounds = array<i64: 8, 32>}, {transform_indices = @transform_1, window_bounds = array<i64: 32, 128>}, {transform_indices = @transform_2, window_bounds = array<i64: 1, 128>}, {transform_indices = @transform_3, window_bounds = array<i64: 8, 128>}]} {
    %c0 = arith.constant 0 : index
    %c0_0 = arith.constant 0 : index
    %0 = vector.load %arg2[%c0, %c0_0] : memref<8x32xbf16, #tpu.memory_space<vmem>>, vector<8x32xbf16>
    %c0_1 = arith.constant 0 : index
    %c0_2 = arith.constant 0 : index
    %1 = vector.load %arg3[%c0_1, %c0_2] : memref<32x128xbf16, #tpu.memory_space<vmem>>, vector<32x128xbf16>
    %cst = arith.constant dense<0.000000e+00> : vector<8x128xf32>
    %2 = tpu.matmul %0, %1, %cst {dimension_numbers = #tpu.dot_dimension_numbers<[1], [0], [0], [1], [0, 0, 1, 1], [], []>} : vector<8x32xbf16>, vector<32x128xbf16>, vector<8x128xf32> -> vector<8x128xf32>
    %c0_3 = arith.constant 0 : index
    %c0_4 = arith.constant 0 : index
    %3 = vector.load %arg4[%c0_3, %c0_4] : memref<1x128xf32, #tpu.memory_space<vmem>>, vector<1x128xf32>
    %4 = vector.broadcast %3 : vector<1x128xf32> to vector<8x128xf32>
    %5 = arith.addf %2, %4 : vector<8x128xf32>
    %c0_5 = arith.constant 0 : index
    %c0_6 = arith.constant 0 : index
    %6 = vector.load %arg5[%c0_5, %c0_6] : memref<8x128xf32, #tpu.memory_space<vmem>>, vector<8x128xf32>
    tpu.vector_store %arg5[%c0_5, %c0_6], %5 {strides = array<i32>} : memref<8x128xf32, #tpu.memory_space<vmem>>, vector<8x128xf32>,
    return
  }
  func.func @transform_0(%arg0: i32, %arg1: i32) -> (i32, i32) {
    %c0_i32 = arith.constant 0 : i32
    %c0_i32_0 = arith.constant 0 : i32
    return %arg0, %c0_i32 : i32, i32
  }
  func.func @transform_1(%arg0: i32, %arg1: i32) -> (i32, i32) {
    %c0_i32 = arith.constant 0 : i32
    %c0_i32_0 = arith.constant 0 : i32
    return %c0_i32, %arg1 : i32, i32
  }
  func.func @transform_2(%arg0: i32, %arg1: i32) -> (i32, i32) {
    %c0_i32 = arith.constant 0 : i32
    %c0_i32_0 = arith.constant 0 : i32
    return %c0_i32, %arg1 : i32, i32
  }
  func.func @transform_3(%arg0: i32, %arg1: i32) -> (i32, i32) {
    %c0_i32 = arith.constant 0 : i32
    return %arg0, %arg1 : i32, i32
  }
}

</mosaic_0001>

<bundles_post_ra>
// kernel: tpu_custom_call.1
= control target key start
LH: loop header
LB: loop body
LE: loop exit
PB: predicated region body
PF: predicated region fallthrough
CT: control target
= control target key end

     0   :  { %8 = vsyncpa [#allocation3], 0  ;;  %s235_s0 = inlined_call_operand.hbm [shape: bf16[8,32], index: 0, kind: input, shape index: {}]   ;;  %s236_s1 = inlined_call_operand.hbm [shape: bf16[32,128], index: 1, kind: input, shape index: {}]   ;;  %s237_s2 = inlined_call_operand.vmem [shape: f32[1,128], index: 2, kind: input, shape index: {}]   ;;  %s238_s3 = inlined_call_operand.hbm [shape: f32[8,128], index: 3, kind: output, shape index: {}]  }
   0x1   :  { %9 = vsyncpa [#allocation6], 0 }
   0x2   :  { %10 = vsyncpa [#allocation4], 0  ;;  %s16_s14 = sshll.u32 %s235_s0, 4  ;;  %s198_s15 = smov [#allocation2]   ;;  %s17_s14 = int_to_ptr.hbm [resolvable:$true] %s16_s14 }
   0x3   :  { %s18_s16 = sshll.u32 %s198_s15, 4  ;;  %s26_s19 = sshll.u32 %s236_s1, 4  ;;  %s19_s16 = int_to_ptr.vmem [resolvable:$true] %s18_s16  ;;  %s27_s19 = int_to_ptr.hbm [resolvable:$true] %s26_s19 }
   0x4   :  { %21 = dma.hbm_to_vmem [thread:$0]  %s17_s14, 64, %s19_s16, [#allocation3]  }
   0x5   :  { %s199_s20 = smov [#allocation5]   ;;  %s200_s22 = smov 64  }
   0x6   :  { %s28_s21 = sshll.u32 %s199_s20, 4  ;;  %s201_s23 = smov 4   ;;  %s29_s21 = int_to_ptr.vmem [resolvable:$true] %s28_s21 }
   0x7   :  { %34 = dma.hbm_to_vmem [thread:$0]  %s27_s19, 256, %s29_s21, [#allocation6], %s200_s22, %s200_s22, %s201_s23  }
   0x8   :  { %192 = dma.done.wait [#allocation3], 64  }
   0x9   :  { %193 = vsyncadd [#allocation3], 4294967232 }
   0xa   :  { %194 = dma.done.wait [#allocation6], 256  }
   0xb   :  { %195 = vsyncadd [#allocation6], 4294967040  ;;  %v113_v0 = vld [vmem:[#allocation5 + $0x8] sm:$0xff]  ;;  %v112_v1 = vld [vmem:[#allocation5] sm:$0xff]  ;;  %vm67_vm0 = vcmask 261120   ;;  %s202_s24 = smov [#allocation7]  }
   0xc   :  { %77 = vmatpush.bf16.msra.mxu0 %v113_v0  ;;  %v46_v2 = vld [vmem:[#allocation2] sm:$0xf]  ;;  %s90_s25 = sshll.u32 %s202_s24, 4  ;;  %s92_s28 = sshll.u32 %s238_s3, 4  ;;  %s91_s25 = int_to_ptr.vmem [resolvable:$true] %s90_s25  ;;  %s93_s28 = int_to_ptr.hbm [resolvable:$true] %s92_s28 }
   0xd   :  { %v119_v3 = vld [vmem:[%s237_s2] ss:$0 sm:$0xff] }
  0x10   :  { %78 = vmatpush.bf16.msra.mxu0 %v112_v1 }
  0x13   :  { %111 = vmatmul.msk.bf16.vlgmr.msra.gmra.mxu0 %vm67_vm0, %v46_v2 }
  0x90   :  { %v80_v4 = vpop.f32.mrf.mxu0 }
  0x91   :  { %v81_v5 = vadd.f32 %v119_v3, %v80_v4 }
  0x93   :  { %84 = vst [vmem:[#allocation7] sm:$0xff] %v81_v5 }
  0x94   :  { %95 = dma.vmem_to_hbm [thread:$0]  %s91_s25, 128, %s93_s28, [#allocation4]  }
  0x98   :  { %v82_v6 = vpop.f32.mrf.mxu0 }
  0x99   :  { %196 = dma.done.wait [#allocation4], 128  }
  0x9a   :  { %197 = vsyncadd [#allocation4], 4294967168 }
  0x9b   :  { %100 = vsyncpa [#allocation3], 1 }
  0x9c   :  { %101 = vsyncpa [#allocation6], 1 }
  0x9d   :  { %102 = vsyncpa [#allocation4], 1 }

</bundles_post_ra>
